<compile_context>
chip_gen: v7x
topology: tpu7x:2x2x1
jax: 0.10.0
libtpu: 0.0.40
codegen_flags: <defaults>
</compile_context>

<pallas_src>
import functools

import jax
import jax.numpy as jnp
from jax.experimental import pallas as pl
from jax.experimental.pallas import tpu as pltpu


def _erf(x):
    # Abramowitz & Stegun 7.1.26, |err| < 1.5e-7 -> keeps PyTorch's exact-erf
    # GELU semantics within f32 noise without relying on an erf lowering.
    p = 0.3275911
    a1, a2, a3, a4, a5 = 0.254829592, -0.284496736, 1.421413741, -1.453152027, 1.061405429
    ax = jnp.abs(x)
    t = 1.0 / (1.0 + p * ax)
    poly = ((((a5 * t + a4) * t + a3) * t + a2) * t + a1) * t
    y = 1.0 - poly * jnp.exp(-ax * ax)
    return jnp.where(x < 0.0, -y, y)


def _gelu_exact(x):
    return 0.5 * x * (1.0 + _erf(x * 0.7071067811865476))


_ROLL_IS_JNP_LIKE = None


def _roll_convention_is_jnp_like():
    """Pin pltpu.roll's shift-direction convention once with a tiny probe.

    Keeps the depthwise-conv taps correct regardless of whether the backend's
    rotate matches jnp.roll (out[i] = x[i - shift]) or the opposite sign.
    """
    global _ROLL_IS_JNP_LIKE
    if _ROLL_IS_JNP_LIKE is None:
        def probe(x_ref, o_ref):
            o_ref[...] = pltpu.roll(x_ref[...], shift=1, axis=1)

        x = jnp.arange(8 * 128, dtype=jnp.float32).reshape(8, 128)
        y = pl.pallas_call(
            probe, out_shape=jax.ShapeDtypeStruct((8, 128), jnp.float32))(x)
        _ROLL_IS_JNP_LIKE = bool(jnp.array_equal(y, jnp.roll(x, 1, axis=1)))
    return _ROLL_IS_JNP_LIKE


def _attn_layer_kernel(*refs, num_branches, height, width, kernel_size,
                       temperature, query_idx, roll_is_jnp_like):
    """One batch element per grid step.  Layout: [C (sublanes), H*W (lanes)]."""
    D = num_branches
    H, W = height, width
    K = kernel_size
    p = K // 2
    HW = H * W

    x_refs = refs[:D]                       # each: [1, C, HW]
    (gamma_ref,                             # [C, 1]   LayerScaler gamma
     dww_ref,                               # [K*K, C, 1] depthwise weights
     dwb_ref,                               # [C, 1]   depthwise bias
     pww_ref,                               # [C, C]   pointwise weight (out, in)
     pwb_ref,                               # [C, 1]   pointwise bias
     bn1s_ref, bn1b_ref,                    # [C, 1]   folded BN1 scale / shift
     bn2s_ref, bn2b_ref,                    # [C, 1]   folded BN2 scale / shift
     out_ref) = refs[D:]                    # [1, C, HW]
    C = gamma_ref.shape[0]

    gamma = gamma_ref[...]                                           # [C, 1]

    # ---- Attn.squeeze: global avg pool (ONE lane-axis reduction) + LayerScaler
    inv_hw = 1.0 / float(HW)
    scaled = []
    for d in range(D):
        pooled = jnp.sum(x_refs[d][0], axis=1, keepdims=True) * inv_hw  # [C,1]
        scaled.append(pooled * gamma)                                   # [C,1]

    # ---- logits_d = <scaled_d, scaled_query> / temperature ; softmax over d
    q = scaled[query_idx]
    logits = [jnp.sum(s * q, keepdims=True) / temperature for s in scaled]  # [1,1]
    m = logits[0]
    for l in logits[1:]:
        m = jnp.maximum(m, l)
    exps = [jnp.exp(l - m) for l in logits]
    den = exps[0]
    for e in exps[1:]:
        den = den + e
    weights = [e / den for e in exps]                                # [1,1] each

    # ---- attention-weighted mixture (computed once; no padded duplicate) ----
    mixed = weights[0] * x_refs[0][0]
    for d in range(1, D):
        mixed = mixed + weights[d] * x_refs[d][0]                    # [C, HW]

    # ---- depthwise KxK 'same' conv: lane rolls (XLU) + boundary masks (VPU) --
    lane = jax.lax.broadcasted_iota(jnp.int32, (1, HW), 1)
    wpos = lane % W
    hpos = lane // W
    mxf = [((wpos + (kx - p) >= 0) & (wpos + (kx - p) < W)).astype(jnp.float32)
           for kx in range(K)]
    myf = [((hpos + (ky - p) >= 0) & (hpos + (ky - p) < H)).astype(jnp.float32)
           for ky in range(K)]

    acc = jnp.zeros((C, HW), jnp.float32)
    for ky in range(K):
        dy = ky - p
        for kx in range(K):
            dx = kx - p
            s = dy * W + dx                      # flat source offset of this tap
            if s == 0:
                shifted = mixed
            else:
                amt = (-s) % HW if roll_is_jnp_like else s % HW
                shifted = pltpu.roll(mixed, shift=amt, axis=1)
            w_tap = dww_ref[ky * K + kx]         # [C, 1] per-channel tap weight
            acc = acc + (shifted * (myf[ky] * mxf[kx])) * w_tap

    dw = acc + dwb_ref[...]
    dw = _gelu_exact(dw)
    dw = dw * bn1s_ref[...] + bn1b_ref[...]                  # BN1 (eval, folded)
    res = mixed + dw                                         # residual

    # ---- pointwise 1x1 conv on the MXU: [C,C] @ [C,HW]; no in-kernel reshapes
    z = jnp.dot(pww_ref[...], res, preferred_element_type=jnp.float32)
    z = z + pwb_ref[...]
    z = _gelu_exact(z)
    z = z * bn2s_ref[...] + bn2b_ref[...]                    # BN2 (eval, folded)
    # nn.Dropout(drop_rate=0.0) is identity.

    out_ref[0] = z.astype(out_ref.dtype)


def attn_layer_forward(xs_nchw, params, *, kernel_size, temperature=1.0, query_idx=-1):
    """Pallas AttnLayer.forward. xs_nchw: tuple of [B,C,H,W]. Returns xs + (new_x,)."""
    D = len(xs_nchw)
    B, C, H, W = xs_nchw[0].shape
    HW = H * W
    K = kernel_size
    eps = 1e-5
    qidx = query_idx % D

    # NCHW -> [B, C, H*W]: pure row-major reshape, no transpose / stack / pad.
    xs_flat = [x.reshape(B, C, HW).astype(jnp.float32) for x in xs_nchw]

    def col(v):
        return v.reshape(C, 1).astype(jnp.float32)

    gamma = col(params["gamma"])
    # depthwise weight [K, K, C] -> [K*K, C, 1] (channel along sublanes)
    dww = params["dw_weight"].reshape(K * K, C)[:, :, None].astype(jnp.float32)
    dwb = col(params["dw_bias"])
    # pointwise weight [C_in, C_out] -> [C_out, C_in] so z = Wt @ y
    pww = jnp.transpose(params["pw_weight"], (1, 0)).astype(jnp.float32)
    pwb = col(params["pw_bias"])

    def fold_bn(w, b, mean, var):
        s = w / jnp.sqrt(var + eps)
        return col(s), col(b - mean * s)

    bn1s, bn1b = fold_bn(params["bn1_weight"], params["bn1_bias"],
                         params["bn1_mean"], params["bn1_var"])
    bn2s, bn2b = fold_bn(params["bn2_weight"], params["bn2_bias"],
                         params["bn2_mean"], params["bn2_var"])

    def rep(shape):  # replicated (grid-invariant) parameter spec
        nd = len(shape)
        return pl.BlockSpec(shape, lambda i, _nd=nd: (0,) * _nd)

    kern = functools.partial(
        _attn_layer_kernel, num_branches=D, height=H, width=W, kernel_size=K,
        temperature=float(temperature), query_idx=qidx,
        roll_is_jnp_like=_roll_convention_is_jnp_like())

    out = pl.pallas_call(
        kern,
        out_shape=jax.ShapeDtypeStruct((B, C, HW), jnp.float32),
        grid=(B,),
        in_specs=(
            [pl.BlockSpec((1, C, HW), lambda i: (i, 0, 0)) for _ in range(D)]
            + [rep((C, 1)),               # gamma
               rep((K * K, C, 1)),        # depthwise weight
               rep((C, 1)),               # depthwise bias
               rep((C, C)),               # pointwise weight (out, in)
               rep((C, 1)),               # pointwise bias
               rep((C, 1)), rep((C, 1)),  # BN1 scale/shift
               rep((C, 1)), rep((C, 1))]  # BN2 scale/shift
        ),
        out_specs=pl.BlockSpec((1, C, HW), lambda i: (i, 0, 0)),
        compiler_params=pltpu.CompilerParams(
            dimension_semantics=("parallel",),        # megacore-shard the batch
            vmem_limit_bytes=32 * 1024 * 1024),
    )(*xs_flat, gamma, dww, dwb, pww, pwb, bn1s, bn1b, bn2s, bn2b)

    out_nchw = out.reshape(B, C, H, W)                # free row-major reshape
    return tuple(xs_nchw) + (out_nchw,)


def reference_forward(xs_nchw, params, *, kernel_size, temperature=1.0, query_idx=-1):
    """Plain-JAX reference mirroring the PyTorch module (NCHW)."""
    eps = 1e-5
    xs = jnp.stack(xs_nchw, axis=0)                            # [D, B, C, H, W]
    pooled = xs.mean(axis=(3, 4))                              # [D, B, C]
    scaled = pooled * params["gamma"][None, None, :]
    q = scaled[query_idx]                                      # [B, C]
    logits = (scaled * q[None]).sum(-1) / temperature          # [D, B]
    attn = jax.nn.softmax(logits, axis=0)                      # softmax over d
    mixed = (xs * attn[:, :, None, None, None]).sum(0)         # [B, C, H, W]

    C = mixed.shape[1]
    dw_w = jnp.transpose(params["dw_weight"], (2, 0, 1))[:, None, :, :]   # [C,1,K,K]
    y = jax.lax.conv_general_dilated(
        mixed, dw_w, (1, 1), "SAME",
        dimension_numbers=("NCHW", "OIHW", "NCHW"),
        feature_group_count=C, precision=jax.lax.Precision.HIGHEST)
    y = y + params["dw_bias"][None, :, None, None]
    y = jax.nn.gelu(y, approximate=False)
    s1 = params["bn1_weight"] / jnp.sqrt(params["bn1_var"] + eps)
    b1 = params["bn1_bias"] - params["bn1_mean"] * s1
    y = y * s1[None, :, None, None] + b1[None, :, None, None]
    y = mixed + y                                              # residual

    pw_w = jnp.transpose(params["pw_weight"], (1, 0))[:, :, None, None]   # [Cout,Cin,1,1]
    z = jax.lax.conv_general_dilated(
        y, pw_w, (1, 1), "VALID",
        dimension_numbers=("NCHW", "OIHW", "NCHW"),
        precision=jax.lax.Precision.HIGHEST)
    z = z + params["pw_bias"][None, :, None, None]
    z = jax.nn.gelu(z, approximate=False)
    s2 = params["bn2_weight"] / jnp.sqrt(params["bn2_var"] + eps)
    b2 = params["bn2_bias"] - params["bn2_mean"] * s2
    z = z * s2[None, :, None, None] + b2[None, :, None, None]
    return tuple(xs_nchw) + (z,)


if __name__ == "__main__":
    D, B, C, H, W = 3, 2, 32, 16, 16     # D branch inputs, hidden_dim=C
    K = 5                                # kernel_size
    temperature, init_scale, query_idx = 1.0, 1.0, -1

    key = jax.random.PRNGKey(0)
    kx, kdw, kdb, kpw, kpb = jax.random.split(key, 5)
    xs = tuple(jax.random.normal(k, (B, C, H, W), jnp.float32)
               for k in jax.random.split(kx, D))

    params = {
        # LayerScaler(hidden_dim, init_scale): gamma = init_scale * ones(C)
        "gamma": init_scale * jnp.ones((C,), jnp.float32),
        # depthwise Conv2d(C, C, K, groups=C, padding='same'): weight [C,1,K,K] -> [K,K,C]
        "dw_weight": 0.1 * jax.random.normal(kdw, (K, K, C), jnp.float32),
        "dw_bias": 0.1 * jax.random.normal(kdb, (C,), jnp.float32),
        # pointwise Conv2d(C, C, 1): weight [C,C,1,1] -> [C_in, C_out]
        "pw_weight": 0.1 * jax.random.normal(kpw, (C, C), jnp.float32),
        "pw_bias": 0.1 * jax.random.normal(kpb, (C,), jnp.float32),
        # BatchNorm2d default init (eval mode)
        "bn1_weight": jnp.ones((C,), jnp.float32),
        "bn1_bias": jnp.zeros((C,), jnp.float32),
        "bn1_mean": jnp.zeros((C,), jnp.float32),
        "bn1_var": jnp.ones((C,), jnp.float32),
        "bn2_weight": jnp.ones((C,), jnp.float32),
        "bn2_bias": jnp.zeros((C,), jnp.float32),
        "bn2_mean": jnp.zeros((C,), jnp.float32),
        "bn2_var": jnp.ones((C,), jnp.float32),
    }

    outs = attn_layer_forward(xs, params, kernel_size=K,
                              temperature=temperature, query_idx=query_idx)
    new_x = outs[-1]
    jax.block_until_ready(new_x)

    ref = reference_forward(xs, params, kernel_size=K,
                            temperature=temperature, query_idx=query_idx)[-1]
    max_err = float(jnp.max(jnp.abs(new_x - ref)))
    assert max_err < 5e-3, f"mismatch vs reference: max_err={max_err}"
    print("KERNEL_OK")
</pallas_src>

<mosaic_0001>
module attributes {stable_mosaic.version = 11 : i64} {
  func.func @probe(%arg0: memref<8x128xf32, #tpu.memory_space<vmem>>, %arg1: memref<8x128xf32, #tpu.memory_space<vmem>>) attributes {dimension_semantics = [], scalar_prefetch = 0 : i64, scratch_operands = 0 : i64, tpu.core_type = #tpu.core_type<tc>} {
    %c0 = arith.constant 0 : index
    %c0_0 = arith.constant 0 : index
    %0 = vector.load %arg0[%c0, %c0_0] : memref<8x128xf32, #tpu.memory_space<vmem>>, vector<8x128xf32>
    %c1_i32 = arith.constant 1 : i32
    %1 = tpu.dynamic_rotate %0 by %c1_i32 dim 1 : vector<8x128xf32>, i32 -> vector<8x128xf32>
    %c0_1 = arith.constant 0 : index
    %c0_2 = arith.constant 0 : index
    %2 = vector.load %arg1[%c0_1, %c0_2] : memref<8x128xf32, #tpu.memory_space<vmem>>, vector<8x128xf32>
    tpu.vector_store %arg1[%c0_1, %c0_2], %1 {strides = array<i32>} : memref<8x128xf32, #tpu.memory_space<vmem>>, vector<8x128xf32>,
    return
  }
}

</mosaic_0001>

<bundles_post_ra>
// kernel: tpu_custom_call.1
= control target key start
LH: loop header
LB: loop body
LE: loop exit
PB: predicated region body
PF: predicated region fallthrough
CT: control target
= control target key end

     0   :  { %6 = vsyncpa [#allocation3], 0  ;;  %s128_s0 = inlined_call_operand.hbm [shape: f32[8,128], index: 0, kind: input, shape index: {}]   ;;  %s129_s1 = inlined_call_operand.hbm [shape: f32[8,128], index: 1, kind: output, shape index: {}]  }
   0x1   :  { %7 = vsyncpa [#allocation4], 0  ;;  %s91_s6 = smov [#allocation2]   ;;  %s43_s10 = scalar_lea.hbm %s128_s0, 128 }
   0x2   :  { %s14_s7 = sshll.u32 %s91_s6, 4  ;;  %p44_p0 = scmp.ne.s32.totalorder %s128_s0, %s43_s10  ;;  %s15_s7 = int_to_ptr.vmem [resolvable:$true] %s14_s7 }
   0x3   :  { %p47_p1 = scmp.lt.u32.totalorder %s43_s10, %s128_s0 }
   0x5   :  { %p49_p2 = pnand %p47_p1, %p44_p0 }
   0x7   :  { %52 = shalt.err (!%p49_p2)
}
   0x8   :  { %s53_s15 = scalar_lea.vmem %s15_s7, 128  ;;  %p58_p4 = scmp.lt.s32.totalorder %s15_s7, %s15_s7 }
   0x9   :  { %p54_p3 = scmp.ne.s32.totalorder %s15_s7, %s53_s15  ;;  %p59_p5 = scmp.lt.s32.totalorder %s53_s15, %s53_s15 }
   0xb   :  { %p60_p6 = por %p59_p5, %p58_p4 }
   0xd   :  { %p61_p7 = pnand %p60_p6, %p54_p3 }
   0xf   :  { %64 = shalt.err (!%p61_p7)
}
  0x10   :  { %17 = dma.hbm_to_vmem [thread:$0]  %s128_s0, 128, %s15_s7, [#allocation3]  }
  0x11   :  { %87 = dma.done.wait [#allocation3], 128  }
  0x12   :  { %88 = vsyncadd [#allocation3], 4294967168  ;;  %v21_v0 = vld [vmem:[#allocation2] sm:$0xff]  ;;  %s92_s18 = smov 1   ;;  %s93_s19 = smov [#allocation5]  }
  0x13   :  { %22 = vrot.lane.b32.xlu0 %v21_v0, %s92_s18  ;;  %s31_s20 = sshll.u32 %s93_s19, 4  ;;  %s32_s20 = int_to_ptr.vmem [resolvable:$true] %s31_s20 }
  0x14   :  { %s65_s21 = scalar_lea.vmem %s32_s20, 128  ;;  %p70_p9 = scmp.lt.s32.totalorder %s32_s20, %s32_s20 }
  0x15   :  { %p66_p8 = scmp.ne.s32.totalorder %s32_s20, %s65_s21  ;;  %p71_p10 = scmp.lt.s32.totalorder %s65_s21, %s65_s21 }
  0x17   :  { %p72_p11 = por %p71_p10, %p70_p9 }
  0x19   :  { %p73_p12 = pnand %p72_p11, %p66_p8 }
  0x85   :  { %v23_v1 = vpop.permute.xlu0 %22 }
  0x86   :  { %24 = vst [vmem:[#allocation5] sm:$0xff] %v23_v1 }
  0x87   :  { %76 = shalt.err (!%p73_p12)
}
  0x88   :  { %s77_s0 = scalar_lea.hbm %s129_s1, 128 }
  0x89   :  { %p78_p13 = scmp.ne.s32.totalorder %s129_s1, %s77_s0  ;;  %p81_p0 = scmp.lt.u32.totalorder %s77_s0, %s129_s1 }
  0x8b   :  { %p83_p1 = pnand %p81_p0, %p78_p13 }
  0x8d   :  { %86 = shalt.err (!%p83_p1)
}
  0x8e   :  { %34 = dma.vmem_to_hbm [thread:$0]  %s32_s20, 128, %s129_s1, [#allocation4]  }
  0x8f   :  { %89 = dma.done.wait [#allocation4], 128  }
  0x90   :  { %90 = vsyncadd [#allocation4], 4294967168 }
  0x91   :  { %38 = vsyncpa [#allocation3], 1 }
  0x92   :  { %39 = vsyncpa [#allocation4], 1 }

</bundles_post_ra>
